<compile_context>
chip_gen: v5e
topology: v5e:2x2
jax: 0.10.0
libtpu: 0.0.40
codegen_flags: <defaults>
</compile_context>

<pallas_src>
import jax
import jax.numpy as jnp
from jax import lax
from jax.experimental import pallas as pl
from jax.experimental.pallas import tpu as pltpu

VOCAB = 32
EMB = 8
H1 = 16
H2 = 32
H3 = 8
OUT_W = H3 + H2          # fused output width (y0 | y1) = 40
MAX_TILE_N = 1024        # token rows per grid step (multiple of 8)


def _round_up(x, m):
    return (x + m - 1) // m * m


def _fused_table_kernel(ids_ref, table_ref, out_ref):
    # ids_ref:   (TILE_N, 1)  int32   (current token tile)
    # table_ref: (VOCAB, OUT_W) f32   (resident across all grid steps)
    # out_ref:   (TILE_N, OUT_W) f32  (fused y0|y1 slab)
    ids = ids_ref[...]                                            # (T, 1)
    n = ids.shape[0]
    iota = lax.broadcasted_iota(jnp.int32, (n, VOCAB), 1)         # (T, VOCAB)
    onehot = (ids == iota).astype(jnp.float32)                    # (T, VOCAB)
    out_ref[...] = jnp.dot(
        onehot, table_ref[...],
        preferred_element_type=jnp.float32).astype(out_ref.dtype)


def three_linear_model(input_ids, params):
    """input_ids: (B, S) int32. Returns (y0: (B,S,8), y1: (B,S,32)) in f32."""
    B, S = input_ids.shape
    N = B * S

    # --- exact algebraic fusion (all done once in the wrapper, f32) ---------
    w13 = params["w1"].T @ params["w3"].T                 # (EMB, H3)   8x8
    b13 = params["b1"] @ params["w3"].T + params["b3"]    # (H3,)
    t0 = params["emb"] @ w13 + b13                        # (VOCAB, H3)
    t1 = params["emb"] @ params["w2"].T                   # (VOCAB, H2)
    table = jnp.concatenate([t0, t1], axis=1)             # (VOCAB, OUT_W)

    # --- token tiling (multiple of 8 rows; pad N up to a whole grid) --------
    tile_n = min(MAX_TILE_N, _round_up(N, 8))
    n_pad = _round_up(N, tile_n)
    ids_flat = input_ids.reshape(-1).astype(jnp.int32)
    if n_pad != N:
        ids_flat = jnp.pad(ids_flat, (0, n_pad - N))      # padded rows discarded
    ids_2d = ids_flat.reshape(n_pad, 1)

    grid = (n_pad // tile_n,)
    out = pl.pallas_call(
        _fused_table_kernel,
        out_shape=jax.ShapeDtypeStruct((n_pad, OUT_W), jnp.float32),
        grid=grid,
        in_specs=[
            pl.BlockSpec((tile_n, 1), lambda i: (i, 0)),          # token ids
            pl.BlockSpec((VOCAB, OUT_W), lambda i: (0, 0)),       # resident table
        ],
        out_specs=pl.BlockSpec((tile_n, OUT_W), lambda i: (i, 0)),
        compiler_params=pltpu.CompilerParams(
            dimension_semantics=("parallel",)),
        cost_estimate=pl.CostEstimate(
            flops=2 * n_pad * VOCAB * OUT_W,
            transcendentals=0,
            bytes_accessed=(n_pad * 1 * 4            # ids in
                            + VOCAB * OUT_W * 4      # table in
                            + n_pad * OUT_W * 4)),   # fused output out
    )(ids_2d, table)

    y0 = out[:N, :H3].reshape(B, S, H3)
    y1 = out[:N, H3:].reshape(B, S, H2)
    return y0, y1


def init_params(key):
    """Deterministic parameter init matching the PyTorch module's shapes."""
    ks = jax.random.split(key, 6)

    def unif(k, shape, fan_in):
        bound = 1.0 / jnp.sqrt(fan_in)
        return jax.random.uniform(k, shape, jnp.float32, -bound, bound)

    return {
        "emb": jax.random.normal(ks[0], (VOCAB, EMB), jnp.float32),
        "w1": unif(ks[1], (H1, EMB), EMB),   # linear1: 8 -> 16
        "b1": unif(ks[2], (H1,), EMB),
        "w2": unif(ks[3], (H2, EMB), EMB),   # linear2: 8 -> 32, no bias
        "w3": unif(ks[4], (H3, H1), H1),     # linear3: 16 -> 8
        "b3": unif(ks[5], (H3,), H1),
    }


def _reference(input_ids, params):
    x = params["emb"][input_ids]
    y0 = (x @ params["w1"].T + params["b1"]) @ params["w3"].T + params["b3"]
    y1 = x @ params["w2"].T
    return y0, y1


if __name__ == "__main__":
    key = jax.random.PRNGKey(0)
    k_param, k_ids, k_ids2 = jax.random.split(key, 3)
    params = init_params(k_param)

    fwd = jax.jit(three_linear_model)

    # Small case (single grid step).
    B, S = 2, 8
    input_ids = jax.random.randint(k_ids, (B, S), 0, VOCAB, dtype=jnp.int32)
    y0, y1 = fwd(input_ids, params)
    jax.block_until_ready((y0, y1))
    y0_ref, y1_ref = _reference(input_ids, params)
    assert y0.shape == (B, S, H3) and y1.shape == (B, S, H2)
    assert jnp.allclose(y0, y0_ref, atol=1e-4, rtol=1e-4)
    assert jnp.allclose(y1, y1_ref, atol=1e-4, rtol=1e-4)

    # Larger case exercising the token grid + padded final tile.
    B2, S2 = 4, 300   # N = 1200 -> padded to 2048, grid = 2
    input_ids2 = jax.random.randint(k_ids2, (B2, S2), 0, VOCAB, dtype=jnp.int32)
    y0b, y1b = fwd(input_ids2, params)
    jax.block_until_ready((y0b, y1b))
    y0b_ref, y1b_ref = _reference(input_ids2, params)
    assert jnp.allclose(y0b, y0b_ref, atol=1e-4, rtol=1e-4)
    assert jnp.allclose(y1b, y1b_ref, atol=1e-4, rtol=1e-4)

    print("KERNEL_OK")
</pallas_src>

<mosaic_0001>
module attributes {stable_mosaic.version = 11 : i64} {
  func.func @_fused_table_kernel(%arg0: i32, %arg1: memref<16x1xi32, #tpu.memory_space<vmem>>, %arg2: memref<32x40xf32, #tpu.memory_space<vmem>>, %arg3: memref<16x40xf32, #tpu.memory_space<vmem>>) attributes {dimension_semantics = [#tpu.dimension_semantics<parallel>], iteration_bounds = array<i64: 1>, scalar_prefetch = 0 : i64, scratch_operands = 0 : i64, tpu.core_type = #tpu.core_type<tc>, window_params = [{transform_indices = @transform_0, window_bounds = array<i64: 16, 1>}, {pipeline_mode = #tpu.pipeline_mode<synchronous>, transform_indices = @transform_1, window_bounds = array<i64: 32, 40>}, {transform_indices = @transform_2, window_bounds = array<i64: 16, 40>}]} {
    %c0 = arith.constant 0 : index
    %c0_0 = arith.constant 0 : index
    %0 = vector.load %arg1[%c0, %c0_0] : memref<16x1xi32, #tpu.memory_space<vmem>>, vector<16x1xi32>
    %1 = tpu.iota {dimensions = array<i32: 1>} : vector<16x32xi32>
    %2 = vector.broadcast %0 : vector<16x1xi32> to vector<16x32xi32>
    %3 = arith.cmpi eq, %2, %1 : vector<16x32xi32>
    %4 = arith.extui %3 : vector<16x32xi1> to vector<16x32xi32>
    %5 = arith.sitofp %4 : vector<16x32xi32> to vector<16x32xf32>
    %c0_1 = arith.constant 0 : index
    %c0_2 = arith.constant 0 : index
    %6 = vector.load %arg2[%c0_1, %c0_2] : memref<32x40xf32, #tpu.memory_space<vmem>>, vector<32x40xf32>
    %cst = arith.constant dense<0.000000e+00> : vector<16x40xf32>
    %7 = tpu.matmul %5, %6, %cst {dimension_numbers = #tpu.dot_dimension_numbers<[1], [0], [0], [1], [0, 0, 1, 1], [], []>} : vector<16x32xf32>, vector<32x40xf32>, vector<16x40xf32> -> vector<16x40xf32>
    %c0_3 = arith.constant 0 : index
    %c0_4 = arith.constant 0 : index
    %8 = vector.load %arg3[%c0_3, %c0_4] : memref<16x40xf32, #tpu.memory_space<vmem>>, vector<16x40xf32>
    tpu.vector_store %arg3[%c0_3, %c0_4], %7 {strides = array<i32>} : memref<16x40xf32, #tpu.memory_space<vmem>>, vector<16x40xf32>,
    return
  }
  func.func @transform_0(%arg0: i32) -> (i32, i32) {
    %c0_i32 = arith.constant 0 : i32
    %c0_i32_0 = arith.constant 0 : i32
    return %arg0, %c0_i32 : i32, i32
  }
  func.func @transform_1(%arg0: i32) -> (i32, i32) {
    %c0_i32 = arith.constant 0 : i32
    %c0_i32_0 = arith.constant 0 : i32
    %c0_i32_1 = arith.constant 0 : i32
    return %c0_i32, %c0_i32_0 : i32, i32
  }
  func.func @transform_2(%arg0: i32) -> (i32, i32) {
    %c0_i32 = arith.constant 0 : i32
    %c0_i32_0 = arith.constant 0 : i32
    return %arg0, %c0_i32 : i32, i32
  }
}

</mosaic_0001>

<bundles_post_ra>
// kernel: three_linear_model.1
= control target key start
LH: loop header
LB: loop body
LE: loop exit
PB: predicated region body
PF: predicated region fallthrough
CT: control target
= control target key end

     0   :  { %v79_v0 = vmov 0   ;;  %v13_v7 = vlaneseq  ;;  %vm31_vm0 = vcmask 261120   ;;  %v80_v10 = vmov 0.0   ;;  %s120_s0 = inlined_call_operand.vmem [shape: s32[16,1], index: 0, kind: input, shape index: {}]   ;;  %s121_s1 = inlined_call_operand.vmem [shape: f32[32,40], index: 1, kind: input, shape index: {}]   ;;  %s122_s2 = inlined_call_operand.vmem [shape: f32[16,40], index: 2, kind: output, shape index: {}]  }
   0x1   :  { %78 = vset.pattern.permute.xlu0 %v79_v0  ;;  %v11_v1 = vld [vmem:[%s120_s0] sm:$0xff]  ;;  %v30_v2 = vld [vmem:[%s121_s1 + $0x18] sm:$0xff]  ;;  %v29_v3 = vld [vmem:[%s121_s1 + $0x10] sm:$0xff]  ;;  %vm61_vm3 = vcmask 326656  }
   0x2   :  { %16 = vperm.xlu0 %78, %v11_v1   ;;  %50 = vmatpush.msra.mxu0 %v30_v2  ;;  %v28_v4 = vld [vmem:[%s121_s1 + $0x8] sm:$0xff]  ;;  %v27_v6 = vld [vmem:[%s121_s1] sm:$0xff]  ;;  %v14_v8 = vand.u32 127, %v13_v7 }
   0x3   :  { %72 = vmatpush.msra.mxu1 %v30_v2  ;;  %v12_v5 = vld [vmem:[%s120_s0 + $0x8] sm:$0xff] }
   0x4   :  { %51 = vmatpush.msra.mxu0 %v29_v3 }
   0x5   :  { %73 = vmatpush.msra.mxu1 %v29_v3 }
   0x6   :  { %52 = vmatpush.msra.mxu0 %v28_v4 }
   0x7   :  { %74 = vmatpush.msra.mxu1 %v28_v4 }
   0x8   :  { %53 = vmatpush.msra.mxu0 %v27_v6 }
   0x9   :  { %75 = vmatpush.msra.mxu1 %v27_v6 }
   0xa   :  { %19 = vperm.xlu0 %78, %v12_v5  }
  0x74   :  { %v17_v9 = vpop.permute.xlu0 %16 }
  0x75   :  { %vm21_vm1 = vcmp.eq.s32.totalorder %v17_v9, %v14_v8 }
  0x76   :  { %v68_v11 = vsel %vm21_vm1, 1.0, %v80_v10 }
  0x77   :  { %70 = vmatmul.msk.f32.vlgmr.msra.gmra.mxu0 %vm31_vm0, %v68_v11 }
  0x7c   :  { %v20_v12 = vpop.permute.xlu0 %19 }
  0x7d   :  { %vm22_vm2 = vcmp.eq.s32.totalorder %v20_v12, %v14_v8 }
  0x7e   :  { %v69_v13 = vsel %vm22_vm2, 1.0, %v80_v10 }
  0x7f   :  { %71 = vmatmul.msk.f32.vlgmr.msra.gmra.mxu1 %vm31_vm0, %v69_v13 }
  0xf4   :  { %v55_v14 = vpop.f32.mrf.mxu0 }
  0xf5   :  { %62 = vst.msk [vmem:[%s122_s2] sm:$0xff] %vm61_vm3, %v55_v14 }
  0xfc   :  { %v58_v15 = vpop.f32.mrf.mxu1 }
  0xfd   :  { %63 = vst.msk [vmem:[%s122_s2 + $0x8] sm:$0xff] %vm61_vm3, %v58_v15 }

</bundles_post_ra>
